<compile_context>
chip_gen: v6e
topology: v6e:2x2x1
jax: 0.10.0
libtpu: 0.0.40
codegen_flags: <defaults>
</compile_context>

<pallas_src>
from functools import partial

import jax
import jax.numpy as jnp
import numpy as np
from jax import lax
from jax.experimental import pallas as pl
from jax.experimental.pallas import tpu as pltpu

_LANE = 128      # lanes per vreg (fast axis)
_ACC_SUB = 8     # f32 sublane tile height; accumulator is one (8, 128) tile


def _round_up(x, m):
    return (x + m - 1) // m * m


def _tpu_kind():
    try:
        return jax.devices()[0].device_kind.lower()
    except Exception:
        return ""


def _rmse_partial_kernel(t_ref, p_ref, o_ref, acc_ref, *,
                         valid_rows, block_rows, blocks_per_core, num_blocks):
    c = pl.program_id(0)   # core-split index (parallel)
    s = pl.program_id(1)   # reduction step within this core's range (arbitrary)

    @pl.when(s == 0)
    def _():
        acc_ref[...] = jnp.zeros_like(acc_ref)

    # Upcast in-register so HBM traffic stays at the input dtype width.
    d = t_ref[...].astype(jnp.float32) - p_ref[...].astype(jnp.float32)
    dsq = d * d

    bid = c * blocks_per_core + s  # unclamped linear block id

    # Interior fast path: no mask, pure VPU fold of whole (8,128) vregs into
    # the single-tile accumulator.
    @pl.when(bid < num_blocks - 1)
    def _():
        acc_ref[...] += dsq.reshape(block_rows // _ACC_SUB, _ACC_SUB, _LANE).sum(axis=0)

    # Edge path: the (possibly partial) last real block and any phantom block
    # introduced by the padded core split (bid >= num_blocks; its DMA is
    # clamped by the index_map) are row-masked to zero.
    @pl.when(bid >= num_blocks - 1)
    def _():
        row_ids = bid * block_rows + lax.broadcasted_iota(jnp.int32, dsq.shape, 0)
        masked = jnp.where(row_ids < valid_rows, dsq, 0.0)
        acc_ref[...] += masked.reshape(block_rows // _ACC_SUB, _ACC_SUB, _LANE).sum(axis=0)

    @pl.when(s == pl.num_programs(1) - 1)
    def _():
        # One cross-lane (XLU) reduce per core, at the very end.
        o_ref[0, 0] = jnp.sum(acc_ref[...])


def rmse_loss(truth, predict):
    """sqrt(mean((truth - predict)**2)) over ALL elements (MSELoss 'mean')."""
    assert truth.shape == predict.shape
    n = int(np.prod(truth.shape))
    assert n > 0, "RMSELoss of an empty tensor is undefined"

    t_flat = truth.reshape(-1)
    p_flat = predict.reshape(-1)

    # Kernel handles the largest prefix that is a whole number of (8,128)
    # tiles; the leftover (< 1024 elements) is summed in plain jnp (free).
    rows_kernel = (n // _LANE // _ACC_SUB) * _ACC_SUB
    n_kernel = rows_kernel * _LANE

    extra_ss = jnp.zeros((), jnp.float32)
    if n_kernel < n:
        dt = (lax.slice(t_flat, (n_kernel,), (n,)).astype(jnp.float32)
              - lax.slice(p_flat, (n_kernel,), (n,)).astype(jnp.float32))
        extra_ss = jnp.sum(dt * dt)

    if rows_kernel == 0:
        # Tiny input: nothing left for the kernel.
        return jnp.sqrt(extra_ss / n)

    # Free reshape when n_kernel == n (no copy); otherwise only the aligned
    # prefix feeds the kernel (no full-array pad copy is ever materialized).
    t2 = lax.slice(t_flat, (0,), (n_kernel,)).reshape(rows_kernel, _LANE)
    p2 = lax.slice(p_flat, (0,), (n_kernel,)).reshape(rows_kernel, _LANE)

    # Generation-dependent knobs.
    kind = _tpu_kind()
    is_v7x = ("v7" in kind) or ("tpu7" in kind)
    is_v6 = ("v6" in kind) or ("trillium" in kind)
    ncores = 2 if is_v7x else 1                       # 2 TCs only on v7x
    target_block_bytes = (4 << 20) if (is_v6 or is_v7x) else (2 << 20)

    itemsize = jnp.dtype(truth.dtype).itemsize
    max_block_rows = max(_ACC_SUB, target_block_bytes // (_LANE * itemsize))

    # Derive block_rows from the per-core share so both v7x cores get real
    # work; never exceeds rows_kernel (which is a multiple of 8).
    block_rows = min(max_block_rows,
                     _round_up(pl.cdiv(rows_kernel, ncores), _ACC_SUB))
    num_blocks = pl.cdiv(rows_kernel, block_rows)
    blocks_per_core = pl.cdiv(num_blocks, ncores)

    # VMEM budget: 2 inputs x 2 pipeline buffers x block (+ one (8,128) acc).
    block_bytes = block_rows * _LANE * itemsize
    vmem_limit = int(max(16 << 20, min(40 << 20, 4 * block_bytes + (8 << 20))))

    def in_index_map(c, s):
        # Clamp so phantom blocks of the padded core split never DMA out of
        # bounds; their contribution is masked to zero inside the kernel.
        return (jnp.minimum(c * blocks_per_core + s, num_blocks - 1), 0)

    partials = pl.pallas_call(
        partial(
            _rmse_partial_kernel,
            valid_rows=rows_kernel,
            block_rows=block_rows,
            blocks_per_core=blocks_per_core,
            num_blocks=num_blocks,
        ),
        out_shape=jax.ShapeDtypeStruct((ncores, 1), jnp.float32),
        grid_spec=pltpu.PrefetchScalarGridSpec(
            num_scalar_prefetch=0,
            grid=(ncores, blocks_per_core),
            in_specs=[
                pl.BlockSpec((block_rows, _LANE), in_index_map),
                pl.BlockSpec((block_rows, _LANE), in_index_map),
            ],
            out_specs=pl.BlockSpec(
                (1, 1), lambda c, s: (c, 0), memory_space=pltpu.SMEM
            ),
            scratch_shapes=[pltpu.VMEM((_ACC_SUB, _LANE), jnp.float32)],
        ),
        compiler_params=pltpu.CompilerParams(
            dimension_semantics=("parallel", "arbitrary"),
            vmem_limit_bytes=vmem_limit,
        ),
    )(t2, p2)

    # Combine per-core partial sums (and the jnp tail) BEFORE divide/sqrt.
    total_ss = jnp.sum(partials) + extra_ss
    return jnp.sqrt(total_ss / n)


if __name__ == "__main__":
    key = jax.random.PRNGKey(0)
    k1, k2 = jax.random.split(key)

    # Primary test: small NCHW-shaped inputs (lane-aligned element count).
    shape = (2, 4, 16, 16)
    truth = jax.random.normal(k1, shape, dtype=jnp.float32)
    predict = jax.random.normal(k2, shape, dtype=jnp.float32)

    loss = jax.jit(rmse_loss)(truth, predict)
    jax.block_until_ready(loss)
    ref = jnp.sqrt(jnp.mean((truth - predict) ** 2))
    assert np.allclose(np.asarray(loss), np.asarray(ref), rtol=1e-5, atol=1e-6), (
        loss, ref
    )

    # Secondary test: ragged element count exercises the prefix + jnp-tail path.
    k3, k4 = jax.random.split(k2)
    shape2 = (5, 13, 17)   # 1105 elements: 1024 in kernel, 81 in jnp tail
    t2 = jax.random.normal(k3, shape2, dtype=jnp.float32)
    p2 = jax.random.normal(k4, shape2, dtype=jnp.float32)
    loss2 = jax.jit(rmse_loss)(t2, p2)
    jax.block_until_ready(loss2)
    ref2 = jnp.sqrt(jnp.mean((t2 - p2) ** 2))
    assert np.allclose(np.asarray(loss2), np.asarray(ref2), rtol=1e-5, atol=1e-6), (
        loss2, ref2
    )

    print("KERNEL_OK")
</pallas_src>

<mosaic_0001>
module attributes {stable_mosaic.version = 11 : i64} {
  func.func @_rmse_partial_kernel(%arg0: i32, %arg1: i32, %arg2: memref<16x128xf32, #tpu.memory_space<vmem>>, %arg3: memref<16x128xf32, #tpu.memory_space<vmem>>, %arg4: memref<1x1xf32, #tpu.memory_space<smem>>, %arg5: memref<8x128xf32, #tpu.memory_space<vmem>>) attributes {dimension_semantics = [#tpu.dimension_semantics<parallel>, #tpu.dimension_semantics<arbitrary>], iteration_bounds = array<i64: 1, 1>, scalar_prefetch = 0 : i64, scratch_operands = 1 : i64, tpu.core_type = #tpu.core_type<tc>, window_params = [{transform_indices = @transform_0, window_bounds = array<i64: 16, 128>}, {transform_indices = @transform_1, window_bounds = array<i64: 16, 128>}, {transform_indices = @transform_2, window_bounds = array<i64: 1, 1>}]} {
    %c0_i32 = arith.constant 0 : i32
    %0 = arith.cmpi eq, %arg1, %c0_i32 : i32
    %1 = arith.extui %0 : i1 to i32
    %c0_i32_0 = arith.constant 0 : i32
    %2 = arith.cmpi ne, %1, %c0_i32_0 : i32
    scf.if %2 {
      %cst = arith.constant 0.000000e+00 : f32
      %18 = vector.broadcast %cst : f32 to vector<8x128xf32>
      %c0_10 = arith.constant 0 : index
      %c0_11 = arith.constant 0 : index
      %19 = vector.load %arg5[%c0_10, %c0_11] : memref<8x128xf32, #tpu.memory_space<vmem>>, vector<8x128xf32>
      tpu.vector_store %arg5[%c0_10, %c0_11], %18 {strides = array<i32>} : memref<8x128xf32, #tpu.memory_space<vmem>>, vector<8x128xf32>,
    } else {
    }
    %c0 = arith.constant 0 : index
    %c0_1 = arith.constant 0 : index
    %3 = vector.load %arg2[%c0, %c0_1] : memref<16x128xf32, #tpu.memory_space<vmem>>, vector<16x128xf32>
    %c0_2 = arith.constant 0 : index
    %c0_3 = arith.constant 0 : index
    %4 = vector.load %arg3[%c0_2, %c0_3] : memref<16x128xf32, #tpu.memory_space<vmem>>, vector<16x128xf32>
    %5 = arith.subf %3, %4 : vector<16x128xf32>
    %6 = arith.mulf %5, %5 : vector<16x128xf32>
    %c1_i32 = arith.constant 1 : i32
    %7 = arith.muli %arg0, %c1_i32 : i32
    %8 = arith.addi %7, %arg1 : i32
    %c0_i32_4 = arith.constant 0 : i32
    %9 = arith.cmpi slt, %8, %c0_i32_4 : i32
    %10 = arith.extui %9 : i1 to i32
    %c0_i32_5 = arith.constant 0 : i32
    %11 = arith.cmpi ne, %10, %c0_i32_5 : i32
    scf.if %11 {
      %c0_10 = arith.constant 0 : index
      %c0_11 = arith.constant 0 : index
      %18 = vector.load %arg5[%c0_10, %c0_11] : memref<8x128xf32, #tpu.memory_space<vmem>>, vector<8x128xf32>
      %19 = vector.shape_cast %6 : vector<16x128xf32> to vector<2x8x128xf32>
      %cst = arith.constant dense<0.000000e+00> : vector<8x128xf32>
      %20 = vector.multi_reduction <add>, %19, %cst [0] : vector<2x8x128xf32> to vector<8x128xf32>
      %21 = arith.addf %18, %20 : vector<8x128xf32>
      %c0_12 = arith.constant 0 : index
      %c0_13 = arith.constant 0 : index
      %22 = vector.load %arg5[%c0_12, %c0_13] : memref<8x128xf32, #tpu.memory_space<vmem>>, vector<8x128xf32>
      tpu.vector_store %arg5[%c0_12, %c0_13], %21 {strides = array<i32>} : memref<8x128xf32, #tpu.memory_space<vmem>>, vector<8x128xf32>,
    } else {
    }
    %c0_i32_6 = arith.constant 0 : i32
    %12 = arith.cmpi sge, %8, %c0_i32_6 : i32
    %13 = arith.extui %12 : i1 to i32
    %c0_i32_7 = arith.constant 0 : i32
    %14 = arith.cmpi ne, %13, %c0_i32_7 : i32
    scf.if %14 {
      %c16_i32 = arith.constant 16 : i32
      %18 = arith.muli %8, %c16_i32 : i32
      %19 = tpu.iota {dimensions = array<i32: 0>} : vector<16x128xi32>
      %20 = vector.broadcast %18 : i32 to vector<16x128xi32>
      %21 = arith.addi %20, %19 : vector<16x128xi32>
      %c16_i32_10 = arith.constant 16 : i32
      %22 = vector.broadcast %c16_i32_10 : i32 to vector<16x128xi32>
      %23 = arith.cmpi slt, %21, %22 : vector<16x128xi32>
      %cst = arith.constant 0.000000e+00 : f32
      %24 = vector.broadcast %cst : f32 to vector<16x128xf32>
      %25 = arith.select %23, %6, %24 : vector<16x128xi1>, vector<16x128xf32>
      %c0_11 = arith.constant 0 : index
      %c0_12 = arith.constant 0 : index
      %26 = vector.load %arg5[%c0_11, %c0_12] : memref<8x128xf32, #tpu.memory_space<vmem>>, vector<8x128xf32>
      %27 = vector.shape_cast %25 : vector<16x128xf32> to vector<2x8x128xf32>
      %cst_13 = arith.constant dense<0.000000e+00> : vector<8x128xf32>
      %28 = vector.multi_reduction <add>, %27, %cst_13 [0] : vector<2x8x128xf32> to vector<8x128xf32>
      %29 = arith.addf %26, %28 : vector<8x128xf32>
      %c0_14 = arith.constant 0 : index
      %c0_15 = arith.constant 0 : index
      %30 = vector.load %arg5[%c0_14, %c0_15] : memref<8x128xf32, #tpu.memory_space<vmem>>, vector<8x128xf32>
      tpu.vector_store %arg5[%c0_14, %c0_15], %29 {strides = array<i32>} : memref<8x128xf32, #tpu.memory_space<vmem>>, vector<8x128xf32>,
    } else {
    }
    %c0_i32_8 = arith.constant 0 : i32
    %15 = arith.cmpi eq, %arg1, %c0_i32_8 : i32
    %16 = arith.extui %15 : i1 to i32
    %c0_i32_9 = arith.constant 0 : i32
    %17 = arith.cmpi ne, %16, %c0_i32_9 : i32
    scf.if %17 {
      %c0_10 = arith.constant 0 : index
      %c0_11 = arith.constant 0 : index
      %18 = vector.load %arg5[%c0_10, %c0_11] : memref<8x128xf32, #tpu.memory_space<vmem>>, vector<8x128xf32>
      %19 = vector.shape_cast %18 : vector<8x128xf32> to vector<1x8x128xf32>
      %cst = arith.constant dense<0.000000e+00> : vector<1xf32>
      %20 = vector.multi_reduction <add>, %19, %cst [1, 2] : vector<1x8x128xf32> to vector<1xf32>
      %21 = vector.shape_cast %20 : vector<1xf32> to vector<1x1x1xf32>
      %22 = vector.extract %21[0, 0, 0] : f32 from vector<1x1x1xf32>
      %c0_12 = arith.constant 0 : index
      %c0_13 = arith.constant 0 : index
      %23 = memref.load %arg4[%c0_12, %c0_13] : memref<1x1xf32, #tpu.memory_space<smem>>
      memref.store %22, %arg4[%c0_12, %c0_13] : memref<1x1xf32, #tpu.memory_space<smem>>
    } else {
    }
    return
  }
  func.func @transform_0(%arg0: i32, %arg1: i32) -> (i32, i32) {
    %c1_i32 = arith.constant 1 : i32
    %0 = arith.muli %arg0, %c1_i32 : i32
    %1 = arith.addi %0, %arg1 : i32
    %c0_i32 = arith.constant 0 : i32
    %2 = arith.minsi %1, %c0_i32 : i32
    %c0_i32_0 = arith.constant 0 : i32
    %c0_i32_1 = arith.constant 0 : i32
    return %2, %c0_i32_0 : i32, i32
  }
  func.func @transform_1(%arg0: i32, %arg1: i32) -> (i32, i32) {
    %c1_i32 = arith.constant 1 : i32
    %0 = arith.muli %arg0, %c1_i32 : i32
    %1 = arith.addi %0, %arg1 : i32
    %c0_i32 = arith.constant 0 : i32
    %2 = arith.minsi %1, %c0_i32 : i32
    %c0_i32_0 = arith.constant 0 : i32
    %c0_i32_1 = arith.constant 0 : i32
    return %2, %c0_i32_0 : i32, i32
  }
  func.func @transform_2(%arg0: i32, %arg1: i32) -> (i32, i32) {
    %c0_i32 = arith.constant 0 : i32
    %c0_i32_0 = arith.constant 0 : i32
    return %arg0, %c0_i32 : i32, i32
  }
}

</mosaic_0001>

<bundles_post_ra>
// kernel: rmse_loss.1
= control target key start
LH: loop header
LB: loop body
LE: loop exit
PB: predicated region body
PF: predicated region fallthrough
CT: control target
= control target key end

     0   :  { %s201_s0 = inlined_call_operand.vmem [shape: f32[16,128], index: 0, kind: input, shape index: {}]   ;;  %s202_s1 = inlined_call_operand.vmem [shape: f32[16,128], index: 1, kind: input, shape index: {}]   ;;  %s203_s2 = inlined_call_operand.hbm [shape: f32[1,1], index: 2, kind: output, shape index: {}]  }
   0x1   :  { %v81_v0 = vld [vmem:[%s201_s0] sm:$0xff]  ;;  %v82_v1 = vld [vmem:[%s201_s0 + $0x8] sm:$0xff] }
   0x2   :  { %v83_v2 = vld [vmem:[%s202_s1] sm:$0xff]  ;;  %v84_v3 = vld [vmem:[%s202_s1 + $0x8] sm:$0xff] }
   0x3   :  { %v85_v4 = vsub.f32 %v81_v0, %v83_v2 }
   0x4   :  { %7 = vsyncpa [#allocation4], 0  ;;  %v86_v5 = vsub.f32 %v82_v1, %v84_v3  ;;  %s170_s17 = smov [#allocation3]  }
   0x5   :  { %v87_v6 = vmul.f32 %v85_v4, %v85_v4 }
   0x6   :  { %v88_v7 = vmul.f32 %v86_v5, %v86_v5 }
   0x8   :  { %v114_v8 = vadd.f32 %v88_v7, %v87_v6 }
   0xa   :  { %121 = vadd.xlane.f32.xlu0 %v114_v8 }
  0x93   :  { %v122_v9 = vpop.xlane.xlu0 %121 }
  0x94   :  { %v123_v10 = vrot.slane %v122_v9, 4 }
  0x96   :  { %v124_v11 = vadd.f32 %v123_v10, %v122_v9 }
  0x98   :  { %v125_v12 = vrot.slane %v124_v11, 2 }
  0x9a   :  { %v126_v13 = vadd.f32 %v125_v12, %v124_v11 }
  0x9c   :  { %v127_v14 = vrot.slane %v126_v13, 1 }
  0x9e   :  { %v128_v15 = vadd.f32 %v127_v14, %v126_v13 }
  0xa0   :  { %157 = vpush %v128_v15 }
  0xd1   :  { %s158_s0 = spop %157 }
  0xd2   :  { %131 = sst [smem:[#allocation3]] %s158_s0 }
  0xd3   :  { %139 = dma.smem_to_hbm %s170_s17, 16, %s203_s2, [#allocation4]  }
  0xd4   :  { %168 = dma.done.wait [#allocation4], 16  }
  0xd5   :  { %169 = vsyncadd [#allocation4], 4294967280 }
  0xd6   :  { %143 = sfence }
  0xd7   :  { %144 = vsyncpa [#allocation4], 1 }

</bundles_post_ra>
